<compile_context>
chip_gen: v7x
topology: tpu7x:2x2x1
jax: 0.10.0
libtpu: 0.0.40
codegen_flags: <defaults>
</compile_context>

<pallas_src>
import math

import jax
import jax.numpy as jnp
from jax import lax
from jax.experimental import pallas as pl
from jax.experimental.pallas import tpu as pltpu


def _fcnet_kernel(x_ref, w1_ref, w2_ref, o_ref):
    # x_ref:  [TM, D]  native-dtype row tile of the flattened input (cast here)
    # w1_ref: [H,  D]  compute dtype, nn.Linear layout, VMEM-resident
    # w2_ref: [C,  H]  compute dtype, VMEM-resident
    # o_ref:  [TM, C]  f32 logits tile (C == num_classes, unpadded)
    dn = (((1,), (1,)), ((), ()))  # "x @ W^T": contract last dims of both sides

    # Cast the streamed tile in-register: keeps the HBM read at the caller's
    # dtype and avoids a separate wrapper-side cast pass over all of x.
    x = x_ref[...].astype(w1_ref.dtype)

    hidden = lax.dot_general(x, w1_ref[...], dn, preferred_element_type=jnp.float32)
    hidden = jnp.maximum(hidden, 0.0)  # ReLU on the f32 accumulator

    out = lax.dot_general(
        hidden.astype(w2_ref.dtype), w2_ref[...], dn,
        preferred_element_type=jnp.float32,
    )
    o_ref[...] = out.astype(o_ref.dtype)


def _round_up(x, m):
    return ((x + m - 1) // m) * m


def fcnetwork_forward(x, w1, w2, *, tm=1024, compute_dtype=jnp.bfloat16):
    """Forward pass of FCNetwork: layer2(relu(layer1(x))), no biases.

    x:  [B, ...]           flattened row-major like torch's reshape(B, -1)
    w1: [h, input_dim]     nn.Linear(input_dim, h, bias=False).weight
    w2: [num_classes, h]   nn.Linear(h, num_classes, bias=False).weight
    returns [B, num_classes] float32 logits.
    """
    B = x.shape[0]
    x_flat = x.reshape(B, -1)  # row-major flatten == torch reshape
    D = x_flat.shape[1]
    H, Dw = w1.shape
    C, Hw = w2.shape
    assert Dw == D and Hw == H

    # Weights are tiny and VMEM-resident; cast them once in the wrapper.
    # (Pass compute_dtype=jnp.float32 if strict f32 parity with PyTorch is
    # required; the kernel stays HBM-bound either way.)
    w1_c = w1.astype(compute_dtype)
    w2_c = w2.astype(compute_dtype)

    # Row-tile size (multiple of 16):
    #  - capped so the double-buffered x tile stays <= ~24 MiB (headroom under
    #    v7x's 64 MiB/TC VMEM; v5e/v6e have 128 MiB),
    #  - capped so large batches get >= 4 grid steps (keeps the x DMA
    #    double-buffered and lets "parallel" shard rows across v7x's 2 TCs).
    # No batch padding: the grid uses cdiv and the final block is partial.
    itemsize = jnp.dtype(x_flat.dtype).itemsize
    tm_vmem = max(16, (((24 << 20) // (2 * D * itemsize)) // 16) * 16)
    tm_steps = max(16, _round_up(pl.cdiv(B, 4), 16))
    TM = max(16, min(tm, tm_vmem, tm_steps))

    grid = (pl.cdiv(B, TM),)

    flops = 2 * B * D * H + 2 * B * H * C
    bytes_accessed = (
        x_flat.size * itemsize
        + w1_c.size * w1_c.dtype.itemsize
        + w2_c.size * w2_c.dtype.itemsize
        + B * C * 4
    )

    # W1/W2 use constant index_maps (fetched once, no re-DMA per step). They
    # are still double-buffered by default; at maximum TM on v7x that ~0.5-1.5
    # MiB could be reclaimed with pipeline_mode=pl.Buffered(1) if ever needed.
    # TODO(synk): optional fp8 streaming of x/W1 on v7x (fp8 MXU) would halve
    # the dominant x read again; needs precision validation, so not enabled.
    return pl.pallas_call(
        _fcnet_kernel,
        out_shape=jax.ShapeDtypeStruct((B, C), jnp.float32),
        grid_spec=pltpu.PrefetchScalarGridSpec(
            num_scalar_prefetch=0,
            grid=grid,
            in_specs=[
                pl.BlockSpec((TM, D), lambda i: (i, 0)),  # x: streamed per step
                pl.BlockSpec((H, D), lambda i: (0, 0)),   # W1: VMEM-resident
                pl.BlockSpec((C, H), lambda i: (0, 0)),   # W2: VMEM-resident
            ],
            # Unpadded [TM, C] output block: logits are a tiny fraction of HBM
            # traffic, so the masked (<128-lane) store beats a padded f32
            # [TM, 128] write plus a wrapper-side slice pass.
            out_specs=pl.BlockSpec((TM, C), lambda i: (i, 0)),
        ),
        compiler_params=pltpu.CompilerParams(
            dimension_semantics=("parallel",),     # shard row tiles across TCs
            vmem_limit_bytes=48 * 1024 * 1024,     # tile chooser keeps ~26 MiB live
        ),
        cost_estimate=pl.CostEstimate(
            flops=flops, transcendentals=0, bytes_accessed=bytes_accessed
        ),
    )(x_flat, w1_c, w2_c)


def _init_linear_weight(key, out_features, in_features, dtype=jnp.float32):
    # Mimics PyTorch's default nn.Linear init:
    # kaiming_uniform(a=sqrt(5)) == uniform(-1/sqrt(fan_in), 1/sqrt(fan_in)).
    bound = 1.0 / math.sqrt(in_features)
    return jax.random.uniform(
        key, (out_features, in_features), dtype=dtype, minval=-bound, maxval=bound
    )


if __name__ == "__main__":
    # Small shapes consistent with the module: NCHW input [2, 3, 16, 16]
    # -> input_dim = 3*16*16 = 768, hidden h = 32, num_classes = 10.
    B, Cin, Hs, Ws = 2, 3, 16, 16
    input_dim = Cin * Hs * Ws
    h = 32
    num_classes = 10

    key = jax.random.PRNGKey(0)
    kx, k1, k2 = jax.random.split(key, 3)

    x = jax.random.normal(kx, (B, Cin, Hs, Ws), dtype=jnp.float32)
    w1 = _init_linear_weight(k1, h, input_dim)    # layer1: Linear(input_dim, h)
    w2 = _init_linear_weight(k2, num_classes, h)  # layer2: Linear(h, num_classes)

    out = fcnetwork_forward(x, w1, w2)
    out = jax.block_until_ready(out)
    assert out.shape == (B, num_classes)

    # Reference 1: dtype-matched (bf16 operands, f32 accumulation) — tight check.
    dn = (((1,), (1,)), ((), ()))
    xb = x.reshape(B, -1).astype(jnp.bfloat16)
    w1b = w1.astype(jnp.bfloat16)
    w2b = w2.astype(jnp.bfloat16)
    h_ref = jnp.maximum(
        lax.dot_general(xb, w1b, dn, preferred_element_type=jnp.float32), 0.0
    )
    ref_bf16 = lax.dot_general(
        h_ref.astype(jnp.bfloat16), w2b, dn, preferred_element_type=jnp.float32
    )
    assert jnp.allclose(out, ref_bf16, atol=2e-3, rtol=2e-3)

    # Reference 2: full-f32 math (exact PyTorch module semantics) — loose check
    # since the kernel uses bf16 operands on the MXU.
    ref_f32 = jnp.maximum(x.reshape(B, -1) @ w1.T, 0.0) @ w2.T
    assert jnp.allclose(out, ref_f32, atol=5e-2, rtol=5e-2)

    print("KERNEL_OK")
</pallas_src>

<mosaic_0001>
module attributes {stable_mosaic.version = 11 : i64} {
  func.func @_fcnet_kernel(%arg0: i32, %arg1: memref<16x768xf32, #tpu.memory_space<vmem>>, %arg2: memref<32x768xbf16, #tpu.memory_space<vmem>>, %arg3: memref<10x32xbf16, #tpu.memory_space<vmem>>, %arg4: memref<16x10xf32, #tpu.memory_space<vmem>>) attributes {dimension_semantics = [#tpu.dimension_semantics<parallel>], iteration_bounds = array<i64: 1>, scalar_prefetch = 0 : i64, scratch_operands = 0 : i64, tpu.core_type = #tpu.core_type<tc>, window_params = [{transform_indices = @transform_0, window_bounds = array<i64: 16, 768>}, {pipeline_mode = #tpu.pipeline_mode<synchronous>, transform_indices = @transform_1, window_bounds = array<i64: 32, 768>}, {pipeline_mode = #tpu.pipeline_mode<synchronous>, transform_indices = @transform_2, window_bounds = array<i64: 10, 32>}, {transform_indices = @transform_3, window_bounds = array<i64: 16, 10>}]} {
    %c0 = arith.constant 0 : index
    %c0_0 = arith.constant 0 : index
    %0 = vector.load %arg1[%c0, %c0_0] : memref<16x768xf32, #tpu.memory_space<vmem>>, vector<16x768xf32>
    %1 = arith.truncf %0 : vector<16x768xf32> to vector<16x768xbf16>
    %c0_1 = arith.constant 0 : index
    %c0_2 = arith.constant 0 : index
    %2 = vector.load %arg2[%c0_1, %c0_2] : memref<32x768xbf16, #tpu.memory_space<vmem>>, vector<32x768xbf16>
    %cst = arith.constant dense<0.000000e+00> : vector<16x32xf32>
    %3 = tpu.matmul %1, %2, %cst {dimension_numbers = #tpu.dot_dimension_numbers<[1], [1], [0], [0], [0, 0, 1, 0], [], []>} : vector<16x768xbf16>, vector<32x768xbf16>, vector<16x32xf32> -> vector<16x32xf32>
    %cst_3 = arith.constant 0.000000e+00 : f32
    %4 = vector.broadcast %cst_3 : f32 to vector<16x32xf32>
    %5 = arith.maximumf %3, %4 : vector<16x32xf32>
    %6 = arith.truncf %5 : vector<16x32xf32> to vector<16x32xbf16>
    %c0_4 = arith.constant 0 : index
    %c0_5 = arith.constant 0 : index
    %7 = vector.load %arg3[%c0_4, %c0_5] : memref<10x32xbf16, #tpu.memory_space<vmem>>, vector<10x32xbf16>
    %cst_6 = arith.constant dense<0.000000e+00> : vector<16x10xf32>
    %8 = tpu.matmul %6, %7, %cst_6 {dimension_numbers = #tpu.dot_dimension_numbers<[1], [1], [0], [0], [0, 0, 1, 0], [], []>} : vector<16x32xbf16>, vector<10x32xbf16>, vector<16x10xf32> -> vector<16x10xf32>
    %c0_7 = arith.constant 0 : index
    %c0_8 = arith.constant 0 : index
    %9 = vector.load %arg4[%c0_7, %c0_8] : memref<16x10xf32, #tpu.memory_space<vmem>>, vector<16x10xf32>
    tpu.vector_store %arg4[%c0_7, %c0_8], %8 {strides = array<i32>} : memref<16x10xf32, #tpu.memory_space<vmem>>, vector<16x10xf32>,
    return
  }
  func.func @transform_0(%arg0: i32) -> (i32, i32) {
    %c0_i32 = arith.constant 0 : i32
    %c0_i32_0 = arith.constant 0 : i32
    return %arg0, %c0_i32 : i32, i32
  }
  func.func @transform_1(%arg0: i32) -> (i32, i32) {
    %c0_i32 = arith.constant 0 : i32
    %c0_i32_0 = arith.constant 0 : i32
    %c0_i32_1 = arith.constant 0 : i32
    return %c0_i32, %c0_i32_0 : i32, i32
  }
  func.func @transform_2(%arg0: i32) -> (i32, i32) {
    %c0_i32 = arith.constant 0 : i32
    %c0_i32_0 = arith.constant 0 : i32
    %c0_i32_1 = arith.constant 0 : i32
    return %c0_i32, %c0_i32_0 : i32, i32
  }
  func.func @transform_3(%arg0: i32) -> (i32, i32) {
    %c0_i32 = arith.constant 0 : i32
    %c0_i32_0 = arith.constant 0 : i32
    return %arg0, %c0_i32 : i32, i32
  }
}

</mosaic_0001>

<bundles_post_ra>
// kernel: tpu_custom_call.1
= control target key start
LH: loop header
LB: loop body
LE: loop exit
PB: predicated region body
PF: predicated region fallthrough
CT: control target
= control target key end

     0   :  { %8 = vsyncpa [#allocation3], 0  ;;  %s746_s0 = inlined_call_operand.hbm [shape: f32[2,768], index: 0, kind: input, shape index: {}]   ;;  %s747_s1 = inlined_call_operand.hbm [shape: bf16[32,768], index: 1, kind: input, shape index: {}]   ;;  %s748_s2 = inlined_call_operand.hbm [shape: bf16[10,32], index: 2, kind: input, shape index: {}]   ;;  %s749_s3 = inlined_call_operand.hbm [shape: f32[2,10], index: 3, kind: output, shape index: {}]  }
   0x1   :  { %9 = vsyncpa [#allocation6], 0 }
   0x2   :  { %10 = vsyncpa [#allocation4], 0 }
   0x3   :  { %15 = vsyncadd [#allocation3], 1344  ;;  %s661_s12 = smov [#allocation5]   ;;  %s567_s16 = scalar_lea.hbm %s747_s1, 1536 }
   0x4   :  { %s28_s13 = sshll.u32 %s661_s12, 4  ;;  %p568_p0 = scmp.ne.s32.totalorder %s747_s1, %s567_s16  ;;  %s29_s13 = int_to_ptr.vmem [resolvable:$true] %s28_s13 }
   0x5   :  { %p571_p1 = scmp.lt.u32.totalorder %s567_s16, %s747_s1 }
   0x7   :  { %p573_p2 = pnand %p571_p1, %p568_p0 }
   0x9   :  { %576 = shalt.err (!%p573_p2)
}
   0xa   :  { %s577_s21 = scalar_lea.vmem %s29_s13, 1536  ;;  %p582_p4 = scmp.lt.s32.totalorder %s29_s13, %s29_s13 }
   0xb   :  { %p578_p3 = scmp.ne.s32.totalorder %s29_s13, %s577_s21  ;;  %p583_p5 = scmp.lt.s32.totalorder %s577_s21, %s577_s21 }
   0xd   :  { %p584_p6 = por %p583_p5, %p582_p4 }
   0xf   :  { %p585_p7 = pnand %p584_p6, %p578_p3 }
  0x11   :  { %588 = shalt.err (!%p585_p7)
}
  0x12   :  { %s662_s22 = smov 384   ;;  %s663_s23 = smov 24  }
  0x13   :  { %34 = dma.hbm_to_vmem [thread:$0]  %s747_s1, 1536, %s29_s13, [#allocation6], %s662_s22, %s662_s22, %s663_s23  }
  0x14   :  { %s664_s26 = smov [#allocation2]   ;;  %s589_s30 = scalar_lea.hbm %s746_s0, 192 }
  0x15   :  { %s16_s27 = sshll.u32 %s664_s26, 4  ;;  %p590_p8 = scmp.ne.s32.totalorder %s746_s0, %s589_s30  ;;  %s17_s27 = int_to_ptr.vmem [resolvable:$true] %s16_s27 }
  0x16   :  { %p593_p9 = scmp.lt.u32.totalorder %s589_s30, %s746_s0 }
  0x18   :  { %p595_p10 = pnand %p593_p9, %p590_p8 }
  0x1a   :  { %598 = shalt.err (!%p595_p10)
}
  0x1b   :  { %s599_s8 = scalar_lea.vmem %s17_s27, 192  ;;  %s603_s1 = scalar_lea.vmem %s17_s27, 1536 }
  0x1c   :  { %p600_p11 = scmp.ne.s32.totalorder %s17_s27, %s599_s8  ;;  %p604_p12 = scmp.lt.s32.totalorder %s17_s27, %s17_s27 }
  0x1d   :  { %p605_p13 = scmp.lt.s32.totalorder %s603_s1, %s599_s8 }
  0x1f   :  { %p606_p0 = por %p605_p13, %p604_p12 }
  0x21   :  { %p607_p1 = pnand %p606_p0, %p600_p11 }
  0x23   :  { %610 = shalt.err (!%p607_p1)
}
  0x24   :  { %s665_s9 = smov 192   ;;  %s666_s10 = smov 12  }
  0x25   :  { %22 = dma.hbm_to_vmem [thread:$0]  %s746_s0, 192, %s17_s27, [#allocation3], %s665_s9, %s665_s9, %s666_s10  }
  0x26   :  { %s667_s13 = smov [#allocation7]   ;;  %s611_s17 = scalar_lea.hbm %s748_s2, 128 }
  0x27   :  { %s40_s14 = sshll.u32 %s667_s13, 4  ;;  %p612_p2 = scmp.ne.s32.totalorder %s748_s2, %s611_s17  ;;  %s41_s14 = int_to_ptr.vmem [resolvable:$true] %s40_s14 }
  0x28   :  { %p615_p3 = scmp.lt.u32.totalorder %s611_s17, %s748_s2 }
  0x2a   :  { %p617_p4 = pnand %p615_p3, %p612_p2 }
  0x2c   :  { %620 = shalt.err (!%p617_p4)
}
  0x2d   :  { %s621_s22 = scalar_lea.vmem %s41_s14, 128  ;;  %p626_p6 = scmp.lt.s32.totalorder %s41_s14, %s41_s14 }
  0x2e   :  { %p622_p5 = scmp.ne.s32.totalorder %s41_s14, %s621_s22  ;;  %p627_p7 = scmp.lt.s32.totalorder %s621_s22, %s621_s22 }
  0x30   :  { %p628_p8 = por %p627_p7, %p626_p6 }
  0x32   :  { %p629_p9 = pnand %p628_p8, %p622_p5 }
  0x34   :  { %632 = shalt.err (!%p629_p9)
}
  0x35   :  { %s668_s0 = smov 64   ;;  %s669_s23 = smov 4  }
  0x36   :  { %46 = dma.hbm_to_vmem [thread:$0]  %s748_s2, 128, %s41_s14, [#allocation6], %s668_s0, %s668_s0, %s669_s23  }
  0x37   :  { %655 = dma.done.wait [#allocation3], 1536  }
  0x38   :  { %656 = vsyncadd [#allocation3], 4294965760 }
  0x39   :  { %657 = dma.done.wait [#allocation6], 1664  }
  0x3a   :  { %658 = vsyncadd [#allocation6], 4294965632  ;;  %v670_v0 = vmov 1983009808   ;;  %v96_v2 = vlaneseq  ;;  %v532_v3 = vld [vmem:[#allocation5 + $0xc] ss:$24 sps:$4 sm:$0xff]  }
  0x3b   :  { %v94_v1 = vunpack.c.l.s4 %v670_v0  ;;  %v534_v6 = vld [vmem:[#allocation5 + $0x8] ss:$24 sps:$4 sm:$0xff]   ;;  %328 = vmatprep.subr.bf16.mxu0 %v532_v3  ;;  %v535_v7 = vld [vmem:[#allocation5 + $0x3c] ss:$24 sps:$4 sm:$0xff]   ;;  %v537_v11 = vld [vmem:[#allocation5 + $0x38] ss:$24 sps:$4 sm:$0xff]  }
  0x3c   :  { %v97_v5 = vshrl.u32 %v96_v2, 7  ;;  %329 = vmatpush1.bf16.xpose.msra.mxu0 %v534_v6  ;;  %v538_v8 = vld [vmem:[#allocation5 + $0x4] ss:$24 sps:$4 sm:$0xff]   ;;  %v540_v9 = vld [vmem:[#allocation5] ss:$24 sps:$4 sm:$0xff]   ;;  %vm420_vm0 = vcmask 261120  }
  0x3d   :  { %v95_v4 = vunpack.c.0.s8 %v94_v1  ;;  %330 = vmatprep.subr.bf16.mxu0 %v535_v7  ;;  %287 = vmatprep.subr.bf16.mxu1 %v538_v8  ;;  %v541_v12 = vld [vmem:[#allocation2 + $0x4] ss:$12 sps:$4 sm:$0xff]   ;;  %v543_v13 = vld [vmem:[#allocation2 + $0x1c] ss:$12 sps:$4 sm:$0xff]   ;;  %v545_v14 = vld [vmem:[#allocation2 + $0x34] ss:$12 sps:$4 sm:$0xff]  }
  0x3e   :  { %288 = vmatpush1.bf16.xpose.msra.mxu1 %v540_v9  ;;  %v547_v15 = vld [vmem:[#allocation2 + $0x4c] ss:$12 sps:$4 sm:$0xff]   ;;  %v554_v22 = vld [vmem:[#allocation5 + $0x30] ss:$24 sps:$4 sm:$0xff]   ;;  %v557_v34 = vld [vmem:[#allocation5 + $0x44] ss:$24 sps:$4 sm:$0xff]  }
  0x3f   :  { %v98_v10 = vsub.s32 %v95_v4, %v97_v5  ;;  %v551_v20 = vld [vmem:[#allocation5 + $0x14] ss:$24 sps:$4 sm:$0xff]   ;;  %v559_v28 = vld [vmem:[#allocation2 + $0x18] ss:$12 sps:$4 sm:$0xff]   ;;  %v560_v29 = vld [vmem:[#allocation2 + $0x30] ss:$12 sps:$4 sm:$0xff]  }
  0x40   :  { %v552_v21 = vld [vmem:[#allocation5 + $0x34] ss:$24 sps:$4 sm:$0xff]   ;;  %v549_v31 = vld [vmem:[#allocation5 + $0x10] ss:$24 sps:$4 sm:$0xff]   ;;  %v564_v43 = vld [vmem:[#allocation2 + $0x38] ss:$12 sps:$4 sm:$0xff]  }
  0x41   :  { %v106_v16 = vrot.slane %v541_v12, %v98_v10  ;;  %v120_v17 = vrot.slane %v543_v13, %v98_v10  ;;  %v160_v18 = vrot.slane %v545_v14, %v98_v10  ;;  %v174_v19 = vrot.slane %v547_v15, %v98_v10  ;;  %289 = vmatprep.subr.bf16.mxu1 %v552_v21  ;;  %v558_v27 = vld [vmem:[#allocation2] ss:$12 sps:$4 sm:$0xff]   ;;  %v561_v32 = vld [vmem:[#allocation2 + $0x48] ss:$12 sps:$4 sm:$0xff]   ;;  %v565_v46 = vld [vmem:[#allocation2 + $0x50] ss:$12 sps:$4 sm:$0xff]  }
  0x42   :  { %v99_v35 = vrot.slane %v558_v27, %v98_v10  ;;  %v113_v36 = vrot.slane %v559_v28, %v98_v10  ;;  %v153_v37 = vrot.slane %v560_v29, %v98_v10  ;;  %v167_v38 = vrot.slane %v561_v32, %v98_v10  ;;  %v562_v41 = vld [vmem:[#allocation2 + $0x8] ss:$12 sps:$4 sm:$0xff]   ;;  %v563_v42 = vld [vmem:[#allocation2 + $0x20] ss:$12 sps:$4 sm:$0xff]  }
  0x43   :  { %v124_v23 = vcombine.high %v106_v16, %v120_v17  ;;  %v178_v24 = vcombine.high %v160_v18, %v174_v19  ;;  %v123_v25 = vcombine.low %v106_v16, %v120_v17  ;;  %v177_v26 = vcombine.low %v160_v18, %v174_v19  ;;  %v555_v55 = vld [vmem:[#allocation5 + $0x40] ss:$24 sps:$4 sm:$0xff]  }
  0x44   :  { %331 = vmatpush1.bf16.xpose.msra.mxu0 %v537_v11  ;;  %v122_v39 = vcombine.high %v99_v35, %v113_v36  ;;  %v121_v40 = vcombine.low %v99_v35, %v113_v36  ;;  %v176_v44 = vcombine.high %v153_v37, %v167_v38  ;;  %v175_v45 = vcombine.low %v153_v37, %v167_v38  ;;  %v566_v60 = vld [vmem:[#allocation7] sm:$0x1f]  }
  0x45   :  { %369 = vmatprep.subr.bf16.mxu0 %v551_v20  ;;  %v212_v30 = vpack.c.bf16 %v178_v24, %v124_v23  ;;  %v211_v33 = vpack.c.bf16 %v177_v26, %v123_v25  ;;  %v133_v47 = vrot.slane %v562_v41, %v98_v10  ;;  %v140_v48 = vrot.slane %v563_v42, %v98_v10 }
  0x46   :  { %290 = vmatpush1.bf16.xpose.msra.mxu1 %v554_v22  ;;  %v187_v49 = vrot.slane %v564_v43, %v98_v10  ;;  %v210_v50 = vpack.c.bf16 %v176_v44, %v122_v39  ;;  %v209_v51 = vpack.c.bf16 %v175_v45, %v121_v40  ;;  %v194_v52 = vrot.slane %v565_v46, %v98_v10 }
  0x47   :  { %360 = vmatprep.mubr.bf16.mxu0 %v212_v30  ;;  %v142_v53 = vcombine.high %v133_v47, %v140_v48  ;;  %v141_v57 = vcombine.low %v133_v47, %v140_v48  ;;  %v671_v61 = vmov 0.0   ;;  %v425_v62 = vsel %vm420_vm0, %v566_v60, 0 }
  0x48   :  { %319 = vmatprep.mubr.bf16.mxu1 %v210_v50  ;;  %v196_v54 = vcombine.high %v187_v49, %v194_v52  ;;  %v195_v58 = vcombine.low %v187_v49, %v194_v52  ;;  %505 = vmatprep.subr.bf16.mxu1 %v671_v61  ;;  %vm672_vm1 = vmmov 0   ;;  %vm468_vm2 = vcmask 80896  }
  0x4a   :  { %v214_v56 = vpack.c.bf16 %v196_v54, %v142_v53  ;;  %v213_v59 = vpack.c.bf16 %v195_v58, %v141_v57 }
  0x4b   :  { %361 = vmatmul.mubr.bf16.vlgmr.msra.gmra.mrb[0].mxu0 %v211_v33 }
  0x4c   :  { %370 = vmatpush1.bf16.xpose.msra.mxu0 %v549_v31  ;;  %401 = vmatprep.mubr.bf16.mxu0 %v214_v56 }
  0x4d   :  { %371 = vmatprep.subr.bf16.mxu0 %v557_v34  ;;  %320 = vmatmul.mubr.bf16.vlgmr.msra.gmra.mrb[0].mxu1 %v209_v51 }
  0x4e   :  { %506 = vmatpush3.bf16.xpose.msra.mxu1 %v425_v62  ;;  %507 = vmatprep.mubr.msk.bf16.mxu1 %vm672_vm1, %v671_v61 }
  0x54   :  { %372 = vmatpush1.bf16.xpose.msra.mxu0 %v555_v55 }
  0x5b   :  { %402 = vmatmul.mubr.bf16.vlgmr.msra.gmra.mrb[0].mxu0 %v213_v59 }
 0x120   :  { %v321_v63 = vpop.f32.mrb[0].mxu1 }
 0x121   :  { %v323_v0 = vpop.f32.mrb[1].mxu1 }
 0x122   :  { %v324_v1 = vpop.f32.mrb[2].mxu1 }
 0x123   :  { %v326_v2 = vpop.f32.mrb[3].mxu1 }
 0x12e   :  { %v403_v3 = vpop.f32.mrb[0].mxu0 }
 0x12f   :  { %v511_v4 = vadd.f32 %v403_v3, %v321_v63  ;;  %v405_v5 = vpop.f32.mrb[1].mxu0 }
 0x130   :  { %v406_v6 = vpop.f32.mrb[2].mxu0 }
 0x131   :  { %v512_v7 = vadd.f32 %v406_v6, %v324_v1  ;;  %v408_v8 = vpop.f32.mrb[3].mxu0  ;;  %v410_v9 = vmax.f32 %v511_v4, 0.0 }
 0x133   :  { %v411_v10 = vmax.f32 %v512_v7, 0.0 }
 0x135   :  { %v412_v11 = vpack.c.bf16 %v411_v10, %v410_v9 }
 0x137   :  { %508 = vmatmul.mubr.msk.bf16.vlgmr.msra.gmra.mrb[4].mxu1 %vm420_vm0, %v412_v11 }
 0x20a   :  { %v461_v12 = vpop.f32.mrb[4].mxu1 }
 0x20b   :  { %469 = vst.msk [vmem:[#allocation8] sm:$0xff] %vm468_vm2, %v461_v12  ;;  %v509_v13 = vpop.f32.mrb[5].mxu1 }
 0x20c   :  { %v464_v14 = vpop.f32.mrb[6].mxu1 }
 0x20d   :  { %470 = vst.msk [vmem:[#allocation8 + $0x8] sm:$0xff] %vm468_vm2, %v464_v14  ;;  %v510_v15 = vpop.f32.mrb[7].mxu1 }
 0x20e   :  { %475 = vsyncadd [#allocation4], 224  ;;  %s673_s2 = smov [#allocation8]  }
 0x20f   :  { %s476_s26 = sshll.u32 %s673_s2, 4  ;;  %s477_s26 = int_to_ptr.vmem [resolvable:$true] %s476_s26 }
 0x210   :  { %s633_s27 = scalar_lea.vmem %s477_s26, 32  ;;  %s637_s28 = scalar_lea.vmem %s477_s26, 256 }
 0x211   :  { %p634_p10 = scmp.ne.s32.totalorder %s477_s26, %s633_s27  ;;  %p638_p11 = scmp.lt.s32.totalorder %s477_s26, %s477_s26 }
 0x212   :  { %p639_p12 = scmp.lt.s32.totalorder %s637_s28, %s633_s27 }
 0x214   :  { %p640_p13 = por %p639_p12, %p638_p11 }
 0x216   :  { %p641_p0 = pnand %p640_p13, %p634_p10 }
 0x218   :  { %644 = shalt.err (!%p641_p0)
}
 0x219   :  { %s645_s4 = scalar_lea.hbm %s749_s3, 32 }
 0x21a   :  { %p646_p1 = scmp.ne.s32.totalorder %s749_s3, %s645_s4  ;;  %p649_p2 = scmp.lt.u32.totalorder %s645_s4, %s749_s3 }
 0x21c   :  { %p651_p3 = pnand %p649_p2, %p646_p1 }
 0x21e   :  { %654 = shalt.err (!%p651_p3)
}
 0x21f   :  { %s674_s1 = smov 32   ;;  %s675_s9 = smov 2  }
 0x220   :  { %482 = dma.vmem_to_hbm [thread:$0]  %s477_s26, 32, %s749_s3, [#allocation4], %s674_s1, %s674_s1, %s675_s9  }
 0x221   :  { %659 = dma.done.wait [#allocation4], 256  }
 0x222   :  { %660 = vsyncadd [#allocation4], 4294967040 }
 0x223   :  { %486 = vsyncpa [#allocation3], 1 }
 0x224   :  { %487 = vsyncpa [#allocation6], 1 }
 0x225   :  { %488 = vsyncpa [#allocation4], 1 }

</bundles_post_ra>
